<compile_context>
chip_gen: v7x
topology: tpu7x:2x2x1
jax: 0.10.0
libtpu: 0.0.40
codegen_flags: <defaults>
</compile_context>

<pallas_src>
import numpy as np
import jax
import jax.numpy as jnp
from jax import lax
from jax.experimental import pallas as pl
from jax.experimental.pallas import tpu as pltpu


# --------------------------------------------------------------------------
# Canonical quaternions (same constants as RotationNet.canonical_quaternions)
# --------------------------------------------------------------------------
_CANONICAL_QUATERNIONS = np.array(
    [[1, 0, 0, 0], [0, 1, 0, 0], [0, 0, 1, 0], [0, 0, 0, 1],
     [-1, 0, 0, 0], [0, -1, 0, 0], [0, 0, -1, 0], [0, 0, 0, -1],
     [0.7071, 0.7071, 0.0, 0.0], [0.7071, 0.0, 0.7071, 0.0],
     [0.7071, 0.0, 0.0, 0.7071], [0.0, 0.7071, 0.7071, 0.0],
     [0.0, 0.7071, 0.0, 0.7071], [0.0, 0.0, 0.7071, 0.7071],
     [0.7071, -0.7071, 0.0, 0.0], [0.7071, 0.0, -0.7071, 0.0],
     [0.7071, 0.0, 0.0, -0.7071], [0.0, 0.7071, -0.7071, 0.0],
     [0.0, 0.7071, 0.0, -0.7071], [0.0, 0.0, 0.7071, -0.7071],
     [-0.7071, 0.7071, 0.0, 0.0], [-0.7071, 0.0, 0.7071, 0.0],
     [-0.7071, 0.0, 0.0, 0.7071], [0.0, -0.7071, 0.7071, 0.0],
     [0.0, -0.7071, 0.0, 0.7071], [0.0, 0.0, -0.7071, 0.7071],
     [-0.7071, -0.7071, 0.0, 0.0], [-0.7071, 0.0, -0.7071, 0.0],
     [-0.7071, 0.0, 0.0, -0.7071], [0.0, -0.7071, -0.7071, 0.0],
     [0.0, -0.7071, 0.0, -0.7071], [0.0, 0.0, -0.7071, -0.7071]],
    dtype=np.float32,
)  # (32, 4)

_NUM_CLASSES = _CANONICAL_QUATERNIONS.shape[0]   # 32
_QUAT_DIM = _CANONICAL_QUATERNIONS.shape[1]      # 4
_EPS = 1e-12

# Pre-normalize the table ONCE on the host: normalize(table)[idx] is exactly
# normalize(table[idx]) row-by-row, so no in-kernel normalize is needed.
_TABLE_NORM = np.maximum(
    np.sqrt(np.sum(_CANONICAL_QUATERNIONS * _CANONICAL_QUATERNIONS,
                   axis=-1, keepdims=True)).astype(np.float32),
    np.float32(_EPS),
)
_TABLE_UNIT = (_CANONICAL_QUATERNIONS / _TABLE_NORM).astype(np.float32)  # (32, 4)

# Lane packing: 4 logical rows (of 32 classes each) per 128-lane vector row.
_PACK = 4
_LANES = _PACK * _NUM_CLASSES        # 128 input lanes per packed row
_OUT_LANES = _PACK * _QUAT_DIM       # 16  output lanes per packed row

# Block-diagonal table: 4 copies of the 32x4 unit table on the diagonal, so a
# single (tm,128) @ (128,16) matmul emits lane-packed quaternions directly.
_TABLE_BLOCKDIAG = np.zeros((_LANES, _OUT_LANES), dtype=np.float32)
for _g in range(_PACK):
    _TABLE_BLOCKDIAG[_g * _NUM_CLASSES:(_g + 1) * _NUM_CLASSES,
                     _g * _QUAT_DIM:(_g + 1) * _QUAT_DIM] = _TABLE_UNIT


# --------------------------------------------------------------------------
# Pallas kernel: packed argmax one-hot -> block-diagonal table matmul
# --------------------------------------------------------------------------
def _rotation_hard_kernel(x_ref, table_ref, o_ref):
    # x_ref:     (tm, 128)  4 logical rows of 32 logits packed per row
    # table_ref: (128, 16)  block-diagonal pre-normalized quaternion table (f32)
    # o_ref:     (tm, 16)   4 packed unit quaternions per row (f32)
    x = x_ref[...]
    if x.dtype != jnp.float32:
        # Do all compares/reductions in f32/int32 (v5e has no bf16 VPU path).
        x = x.astype(jnp.float32)
    tm, lanes = x.shape                                    # lanes == 128

    # Monotone int32 sort key: bitcast and flip magnitude bits of negatives.
    ix = pltpu.bitcast(x, jnp.int32)
    key = ix ^ jnp.where(ix < jnp.int32(0),
                         jnp.int32(0x7FFFFFFF), jnp.int32(0))

    # Fold the first-occurrence tie-break into the key's low 5 bits.
    lane = lax.broadcasted_iota(jnp.int32, (tm, lanes), 1)
    pos = lane & jnp.int32(_NUM_CLASSES - 1)               # lane within group
    key = (key & jnp.int32(-_NUM_CLASSES)) | (jnp.int32(_NUM_CLASSES - 1) - pos)

    # ONE segmented max per 32-lane group: 5 doubling roll steps, masked so no
    # value leaks across group boundaries.  After the loop every lane holds
    # its group's max key.
    neg = jnp.int32(np.iinfo(np.int32).min)
    gmax = key
    for s in (1, 2, 4, 8, 16):
        fwd = pltpu.roll(gmax, lanes - s, 1)               # value from lane i+s
        bwd = pltpu.roll(gmax, s, 1)                       # value from lane i-s
        fwd = jnp.where(pos + s < _NUM_CLASSES, fwd, neg)
        bwd = jnp.where(pos >= s, bwd, neg)
        gmax = jnp.maximum(gmax, jnp.maximum(fwd, bwd))

    # Packed one-hot: keys are unique within a group (distinct tie bits), so
    # exactly one lane per 32-lane group matches.
    onehot = (key == gmax).astype(jnp.float32)             # (tm, 128)

    # Gather the unit quaternions via the block-diagonal table (MXU is idle).
    o_ref[...] = jnp.dot(onehot, table_ref[...],
                         preferred_element_type=jnp.float32)  # (tm, 16)


def rotation_net_hard(x, *, tile_rows=32768, vmem_limit_bytes=None,
                      min_grid_steps=2):
    """Eval-mode forward of RotationNet_Hard.

    x: float array of shape (..., 32) of logits over canonical rotations
       (f32 or bf16; bf16 halves HBM traffic, compares still run in f32).
    returns: float32 array of shape (..., 4), unit quaternions.

    tile_rows: logical rows per grid step (default 32768 = 8192 packed rows,
      ~9 MiB double-buffered VMEM).  min_grid_steps keeps >=2 grid steps when
      possible so v7x's two TensorCores both get work.

    Tie-break caveat: two logits within ~32 f32 ulps may resolve differently
    from torch.argmax's first-occurrence rule (the key's 5 LSBs carry the
    tie-break).  Exact ties match torch (first occurrence wins).
    """
    lead_shape = x.shape[:-1]
    k = x.shape[-1]
    assert k == _NUM_CLASSES, f"expected last dim {_NUM_CLASSES}, got {k}"

    m = int(np.prod(lead_shape)) if lead_shape else 1
    x2 = jnp.reshape(x, (m, k))

    # ----- packed-row tiling -----
    mp = -(-m // _PACK)                          # packed rows holding real data
    mp_aligned = max(8, -(-mp // 8) * 8)         # sublane-aligned packed rows

    tile_p = min(max(int(tile_rows), _PACK * 8) // _PACK, mp_aligned)
    tile_p = max(8, (tile_p // 8) * 8)
    # Keep >=2 grid steps when there is enough work (v7x megacore sharding).
    if min_grid_steps > 1 and mp_aligned >= 8 * min_grid_steps:
        cap = -(-mp_aligned // min_grid_steps)
        cap = max(8, -(-cap // 8) * 8)
        tile_p = min(tile_p, cap)

    mp_pad = -(-mp_aligned // tile_p) * tile_p
    m_pad = mp_pad * _PACK
    if m_pad != m:
        x2 = jnp.pad(x2, ((0, m_pad - m), (0, 0)))
    xp = jnp.reshape(x2, (mp_pad, _LANES))       # free contiguous reinterpret

    table = jnp.asarray(_TABLE_BLOCKDIAG)        # (128, 16), resident in VMEM

    if vmem_limit_bytes is None:
        # Double-buffered tile footprint + table + margin, capped at 48 MiB so
        # the request stays inside v7x's 64 MiB-per-TensorCore physical VMEM.
        in_bytes = tile_p * _LANES * xp.dtype.itemsize
        out_bytes = tile_p * _OUT_LANES * 4
        vmem_limit_bytes = min(
            48 * 1024 * 1024,
            max(16 * 1024 * 1024,
                2 * (in_bytes + out_bytes) + table.size * 4 + 4 * 1024 * 1024))

    grid = (mp_pad // tile_p,)
    out = pl.pallas_call(
        _rotation_hard_kernel,
        out_shape=jax.ShapeDtypeStruct((mp_pad, _OUT_LANES), jnp.float32),
        grid_spec=pltpu.PrefetchScalarGridSpec(
            num_scalar_prefetch=0,
            grid=grid,
            in_specs=[
                # Packed logits tile.  (If exposed DMA waits show up in a
                # profile at large tiles, add pipeline_mode=pl.Buffered(3).)
                pl.BlockSpec((tile_p, _LANES), lambda i: (i, 0)),
                # Tiny block-diagonal table; constant block index => DMA'd
                # once and kept resident.
                pl.BlockSpec((_LANES, _OUT_LANES), lambda i: (0, 0)),
            ],
            out_specs=pl.BlockSpec((tile_p, _OUT_LANES), lambda i: (i, 0)),
        ),
        compiler_params=pltpu.CompilerParams(
            dimension_semantics=("parallel",),
            vmem_limit_bytes=int(vmem_limit_bytes),
        ),
    )(xp, table)

    out = jnp.reshape(out, (m_pad, _QUAT_DIM))[:m]
    return jnp.reshape(out, lead_shape + (_QUAT_DIM,))


# --------------------------------------------------------------------------
# Pure-JAX reference (mirrors the PyTorch eval path) for a sanity check.
# --------------------------------------------------------------------------
def _reference(x):
    idx = jnp.argmax(x, axis=-1)
    prob = jax.nn.one_hot(idx, _NUM_CLASSES, dtype=jnp.float32)
    quat = jnp.sum(prob[..., None] * jnp.asarray(_CANONICAL_QUATERNIONS), axis=-2)
    norm = jnp.maximum(jnp.linalg.norm(quat, axis=-1, keepdims=True), _EPS)
    return quat / norm


if __name__ == "__main__":
    key = jax.random.PRNGKey(0)
    k1, k2 = jax.random.split(key)

    # Test 1: small shape consistent with the module (batch=2, seq=8, classes=32).
    # Round to bf16 grid so no two distinct logits fall within 32 f32 ulps
    # (keeps the documented tie-break caveat out of the deterministic check).
    x1 = jax.random.normal(k1, (2, 8, _NUM_CLASSES), dtype=jnp.float32)
    x1 = x1.astype(jnp.bfloat16).astype(jnp.float32)
    rot1 = jax.block_until_ready(rotation_net_hard(x1))
    ref1 = _reference(x1)
    assert rot1.shape == (2, 8, _QUAT_DIM)
    assert rot1.dtype == jnp.float32
    assert bool(jnp.allclose(rot1, ref1, atol=1e-5, rtol=1e-5)), "mismatch (f32)"

    # Test 2: ragged shape + bf16 inputs + multi-step grid (exercises padding,
    # the bf16 load path and the >=2-grid-step v7x sharding path).
    x2 = jax.random.normal(k2, (3, 37, _NUM_CLASSES), dtype=jnp.float32)
    x2b = x2.astype(jnp.bfloat16)
    rot2 = jax.block_until_ready(rotation_net_hard(x2b, tile_rows=128))
    ref2 = _reference(x2b.astype(jnp.float32))
    assert rot2.shape == (3, 37, _QUAT_DIM)
    assert bool(jnp.allclose(rot2, ref2, atol=1e-5, rtol=1e-5)), "mismatch (bf16)"

    print("KERNEL_OK")
</pallas_src>

<mosaic_0001>
module attributes {stable_mosaic.version = 11 : i64} {
  func.func @_rotation_hard_kernel(%arg0: i32, %arg1: memref<8x128xf32, #tpu.memory_space<vmem>>, %arg2: memref<128x16xf32, #tpu.memory_space<vmem>>, %arg3: memref<8x16xf32, #tpu.memory_space<vmem>>) attributes {dimension_semantics = [#tpu.dimension_semantics<parallel>], iteration_bounds = array<i64: 1>, scalar_prefetch = 0 : i64, scratch_operands = 0 : i64, tpu.core_type = #tpu.core_type<tc>, window_params = [{transform_indices = @transform_0, window_bounds = array<i64: 8, 128>}, {pipeline_mode = #tpu.pipeline_mode<synchronous>, transform_indices = @transform_1, window_bounds = array<i64: 128, 16>}, {transform_indices = @transform_2, window_bounds = array<i64: 8, 16>}]} {
    %c0 = arith.constant 0 : index
    %c0_0 = arith.constant 0 : index
    %0 = vector.load %arg1[%c0, %c0_0] : memref<8x128xf32, #tpu.memory_space<vmem>>, vector<8x128xf32>
    %1 = tpu.bitcast %0 : vector<8x128xf32> -> vector<8x128xi32>
    %c0_i32 = arith.constant 0 : i32
    %2 = vector.broadcast %c0_i32 : i32 to vector<8x128xi32>
    %3 = arith.cmpi slt, %1, %2 : vector<8x128xi32>
    %c2147483647_i32 = arith.constant 2147483647 : i32
    %c0_i32_1 = arith.constant 0 : i32
    %4 = vector.broadcast %c2147483647_i32 : i32 to vector<8x128xi32>
    %5 = vector.broadcast %c0_i32_1 : i32 to vector<8x128xi32>
    %6 = arith.select %3, %4, %5 : vector<8x128xi1>, vector<8x128xi32>
    %7 = arith.xori %1, %6 : vector<8x128xi32>
    %8 = tpu.iota {dimensions = array<i32: 1>} : vector<8x128xi32>
    %c31_i32 = arith.constant 31 : i32
    %9 = vector.broadcast %c31_i32 : i32 to vector<8x128xi32>
    %10 = arith.andi %8, %9 : vector<8x128xi32>
    %c-32_i32 = arith.constant -32 : i32
    %11 = vector.broadcast %c-32_i32 : i32 to vector<8x128xi32>
    %12 = arith.andi %7, %11 : vector<8x128xi32>
    %c31_i32_2 = arith.constant 31 : i32
    %13 = vector.broadcast %c31_i32_2 : i32 to vector<8x128xi32>
    %14 = arith.subi %13, %10 : vector<8x128xi32>
    %15 = arith.ori %12, %14 : vector<8x128xi32>
    %c127_i32 = arith.constant 127 : i32
    %16 = tpu.dynamic_rotate %15 by %c127_i32 dim 1 : vector<8x128xi32>, i32 -> vector<8x128xi32>
    %c1_i32 = arith.constant 1 : i32
    %17 = tpu.dynamic_rotate %15 by %c1_i32 dim 1 : vector<8x128xi32>, i32 -> vector<8x128xi32>
    %c1_i32_3 = arith.constant 1 : i32
    %18 = vector.broadcast %c1_i32_3 : i32 to vector<8x128xi32>
    %19 = arith.addi %10, %18 : vector<8x128xi32>
    %c32_i32 = arith.constant 32 : i32
    %20 = vector.broadcast %c32_i32 : i32 to vector<8x128xi32>
    %21 = arith.cmpi slt, %19, %20 : vector<8x128xi32>
    %c-2147483648_i32 = arith.constant -2147483648 : i32
    %22 = vector.broadcast %c-2147483648_i32 : i32 to vector<8x128xi32>
    %23 = arith.select %21, %16, %22 : vector<8x128xi1>, vector<8x128xi32>
    %c1_i32_4 = arith.constant 1 : i32
    %24 = vector.broadcast %c1_i32_4 : i32 to vector<8x128xi32>
    %25 = arith.cmpi sge, %10, %24 : vector<8x128xi32>
    %c-2147483648_i32_5 = arith.constant -2147483648 : i32
    %26 = vector.broadcast %c-2147483648_i32_5 : i32 to vector<8x128xi32>
    %27 = arith.select %25, %17, %26 : vector<8x128xi1>, vector<8x128xi32>
    %28 = arith.maxsi %23, %27 : vector<8x128xi32>
    %29 = arith.maxsi %15, %28 : vector<8x128xi32>
    %c126_i32 = arith.constant 126 : i32
    %30 = tpu.dynamic_rotate %29 by %c126_i32 dim 1 : vector<8x128xi32>, i32 -> vector<8x128xi32>
    %c2_i32 = arith.constant 2 : i32
    %31 = tpu.dynamic_rotate %29 by %c2_i32 dim 1 : vector<8x128xi32>, i32 -> vector<8x128xi32>
    %c2_i32_6 = arith.constant 2 : i32
    %32 = vector.broadcast %c2_i32_6 : i32 to vector<8x128xi32>
    %33 = arith.addi %10, %32 : vector<8x128xi32>
    %c32_i32_7 = arith.constant 32 : i32
    %34 = vector.broadcast %c32_i32_7 : i32 to vector<8x128xi32>
    %35 = arith.cmpi slt, %33, %34 : vector<8x128xi32>
    %c-2147483648_i32_8 = arith.constant -2147483648 : i32
    %36 = vector.broadcast %c-2147483648_i32_8 : i32 to vector<8x128xi32>
    %37 = arith.select %35, %30, %36 : vector<8x128xi1>, vector<8x128xi32>
    %c2_i32_9 = arith.constant 2 : i32
    %38 = vector.broadcast %c2_i32_9 : i32 to vector<8x128xi32>
    %39 = arith.cmpi sge, %10, %38 : vector<8x128xi32>
    %c-2147483648_i32_10 = arith.constant -2147483648 : i32
    %40 = vector.broadcast %c-2147483648_i32_10 : i32 to vector<8x128xi32>
    %41 = arith.select %39, %31, %40 : vector<8x128xi1>, vector<8x128xi32>
    %42 = arith.maxsi %37, %41 : vector<8x128xi32>
    %43 = arith.maxsi %29, %42 : vector<8x128xi32>
    %c124_i32 = arith.constant 124 : i32
    %44 = tpu.dynamic_rotate %43 by %c124_i32 dim 1 : vector<8x128xi32>, i32 -> vector<8x128xi32>
    %c4_i32 = arith.constant 4 : i32
    %45 = tpu.dynamic_rotate %43 by %c4_i32 dim 1 : vector<8x128xi32>, i32 -> vector<8x128xi32>
    %c4_i32_11 = arith.constant 4 : i32
    %46 = vector.broadcast %c4_i32_11 : i32 to vector<8x128xi32>
    %47 = arith.addi %10, %46 : vector<8x128xi32>
    %c32_i32_12 = arith.constant 32 : i32
    %48 = vector.broadcast %c32_i32_12 : i32 to vector<8x128xi32>
    %49 = arith.cmpi slt, %47, %48 : vector<8x128xi32>
    %c-2147483648_i32_13 = arith.constant -2147483648 : i32
    %50 = vector.broadcast %c-2147483648_i32_13 : i32 to vector<8x128xi32>
    %51 = arith.select %49, %44, %50 : vector<8x128xi1>, vector<8x128xi32>
    %c4_i32_14 = arith.constant 4 : i32
    %52 = vector.broadcast %c4_i32_14 : i32 to vector<8x128xi32>
    %53 = arith.cmpi sge, %10, %52 : vector<8x128xi32>
    %c-2147483648_i32_15 = arith.constant -2147483648 : i32
    %54 = vector.broadcast %c-2147483648_i32_15 : i32 to vector<8x128xi32>
    %55 = arith.select %53, %45, %54 : vector<8x128xi1>, vector<8x128xi32>
    %56 = arith.maxsi %51, %55 : vector<8x128xi32>
    %57 = arith.maxsi %43, %56 : vector<8x128xi32>
    %c120_i32 = arith.constant 120 : i32
    %58 = tpu.dynamic_rotate %57 by %c120_i32 dim 1 : vector<8x128xi32>, i32 -> vector<8x128xi32>
    %c8_i32 = arith.constant 8 : i32
    %59 = tpu.dynamic_rotate %57 by %c8_i32 dim 1 : vector<8x128xi32>, i32 -> vector<8x128xi32>
    %c8_i32_16 = arith.constant 8 : i32
    %60 = vector.broadcast %c8_i32_16 : i32 to vector<8x128xi32>
    %61 = arith.addi %10, %60 : vector<8x128xi32>
    %c32_i32_17 = arith.constant 32 : i32
    %62 = vector.broadcast %c32_i32_17 : i32 to vector<8x128xi32>
    %63 = arith.cmpi slt, %61, %62 : vector<8x128xi32>
    %c-2147483648_i32_18 = arith.constant -2147483648 : i32
    %64 = vector.broadcast %c-2147483648_i32_18 : i32 to vector<8x128xi32>
    %65 = arith.select %63, %58, %64 : vector<8x128xi1>, vector<8x128xi32>
    %c8_i32_19 = arith.constant 8 : i32
    %66 = vector.broadcast %c8_i32_19 : i32 to vector<8x128xi32>
    %67 = arith.cmpi sge, %10, %66 : vector<8x128xi32>
    %c-2147483648_i32_20 = arith.constant -2147483648 : i32
    %68 = vector.broadcast %c-2147483648_i32_20 : i32 to vector<8x128xi32>
    %69 = arith.select %67, %59, %68 : vector<8x128xi1>, vector<8x128xi32>
    %70 = arith.maxsi %65, %69 : vector<8x128xi32>
    %71 = arith.maxsi %57, %70 : vector<8x128xi32>
    %c112_i32 = arith.constant 112 : i32
    %72 = tpu.dynamic_rotate %71 by %c112_i32 dim 1 : vector<8x128xi32>, i32 -> vector<8x128xi32>
    %c16_i32 = arith.constant 16 : i32
    %73 = tpu.dynamic_rotate %71 by %c16_i32 dim 1 : vector<8x128xi32>, i32 -> vector<8x128xi32>
    %c16_i32_21 = arith.constant 16 : i32
    %74 = vector.broadcast %c16_i32_21 : i32 to vector<8x128xi32>
    %75 = arith.addi %10, %74 : vector<8x128xi32>
    %c32_i32_22 = arith.constant 32 : i32
    %76 = vector.broadcast %c32_i32_22 : i32 to vector<8x128xi32>
    %77 = arith.cmpi slt, %75, %76 : vector<8x128xi32>
    %c-2147483648_i32_23 = arith.constant -2147483648 : i32
    %78 = vector.broadcast %c-2147483648_i32_23 : i32 to vector<8x128xi32>
    %79 = arith.select %77, %72, %78 : vector<8x128xi1>, vector<8x128xi32>
    %c16_i32_24 = arith.constant 16 : i32
    %80 = vector.broadcast %c16_i32_24 : i32 to vector<8x128xi32>
    %81 = arith.cmpi sge, %10, %80 : vector<8x128xi32>
    %c-2147483648_i32_25 = arith.constant -2147483648 : i32
    %82 = vector.broadcast %c-2147483648_i32_25 : i32 to vector<8x128xi32>
    %83 = arith.select %81, %73, %82 : vector<8x128xi1>, vector<8x128xi32>
    %84 = arith.maxsi %79, %83 : vector<8x128xi32>
    %85 = arith.maxsi %71, %84 : vector<8x128xi32>
    %86 = arith.cmpi eq, %15, %85 : vector<8x128xi32>
    %87 = arith.extui %86 : vector<8x128xi1> to vector<8x128xi32>
    %88 = arith.sitofp %87 : vector<8x128xi32> to vector<8x128xf32>
    %c0_26 = arith.constant 0 : index
    %c0_27 = arith.constant 0 : index
    %89 = vector.load %arg2[%c0_26, %c0_27] : memref<128x16xf32, #tpu.memory_space<vmem>>, vector<128x16xf32>
    %cst = arith.constant dense<0.000000e+00> : vector<8x16xf32>
    %90 = tpu.matmul %88, %89, %cst {dimension_numbers = #tpu.dot_dimension_numbers<[1], [0], [0], [1], [0, 0, 1, 1], [], []>} : vector<8x128xf32>, vector<128x16xf32>, vector<8x16xf32> -> vector<8x16xf32>
    %c0_28 = arith.constant 0 : index
    %c0_29 = arith.constant 0 : index
    %91 = vector.load %arg3[%c0_28, %c0_29] : memref<8x16xf32, #tpu.memory_space<vmem>>, vector<8x16xf32>
    tpu.vector_store %arg3[%c0_28, %c0_29], %90 {strides = array<i32>} : memref<8x16xf32, #tpu.memory_space<vmem>>, vector<8x16xf32>,
    return
  }
  func.func @transform_0(%arg0: i32) -> (i32, i32) {
    %c0_i32 = arith.constant 0 : i32
    %c0_i32_0 = arith.constant 0 : i32
    return %arg0, %c0_i32 : i32, i32
  }
  func.func @transform_1(%arg0: i32) -> (i32, i32) {
    %c0_i32 = arith.constant 0 : i32
    %c0_i32_0 = arith.constant 0 : i32
    %c0_i32_1 = arith.constant 0 : i32
    return %c0_i32, %c0_i32_0 : i32, i32
  }
  func.func @transform_2(%arg0: i32) -> (i32, i32) {
    %c0_i32 = arith.constant 0 : i32
    %c0_i32_0 = arith.constant 0 : i32
    return %arg0, %c0_i32 : i32, i32
  }
}

</mosaic_0001>

<bundles_post_ra>
// kernel: tpu_custom_call.1
= control target key start
LH: loop header
LB: loop body
LE: loop exit
PB: predicated region body
PF: predicated region fallthrough
CT: control target
= control target key end

     0   :  { %v17_v1 = vlaneseq  ;;  %s425_s0 = inlined_call_operand.vmem [shape: f32[8,128], index: 0, kind: input, shape index: {}]   ;;  %s426_s1 = inlined_call_operand.vmem [shape: f32[128,16], index: 1, kind: input, shape index: {}]   ;;  %s427_s2 = inlined_call_operand.hbm [shape: f32[8,16], index: 2, kind: output, shape index: {}]  }
   0x1   :  { %v12_v0 = vld [vmem:[%s425_s0] sm:$0xff] }
   0x2   :  { %7 = vsyncpa [#allocation3], 0  ;;  %vm14_vm0 = vcmp.lt.s32.totalorder %v12_v0, 0  ;;  %v311_v2 = vmov 0   ;;  %v18_v4 = vand.u32 127, %v17_v1  ;;  %s312_s11 = smov 127  }
   0x3   :  { %v15_v3 = vsel %vm14_vm0, 2147483647, %v311_v2  ;;  %s313_s12 = smov 1   ;;  %s314_s0 = smov 126   ;;  %v91_v25 = vld [vmem:[%s426_s1] sm:$0xff]  ;;  %v92_v26 = vld [vmem:[%s426_s1 + $0x8] sm:$0xff] }
   0x4   :  { %v16_v5 = vxor.u32 %v15_v3, %v12_v0  ;;  %v345_v6 = vand.u32 31, %v18_v4  ;;  %s315_s13 = smov 2   ;;  %s316_s14 = smov 4   ;;  %v93_v27 = vld [vmem:[%s426_s1 + $0x10] sm:$0xff]  ;;  %v318_v28 = vmov 0.0|0.0   ;;  %v248_v29 = vpack.c.bf16 %v92_v26, %v91_v25  ;;  %v94_v30 = vld [vmem:[%s426_s1 + $0x18] sm:$0xff] }
   0x5   :  { %s317_s15 = smov 124   ;;  %247 = vmatprep.subr.bf16.mxu0 %v318_v28  ;;  %v251_v35 = vpack.c.bf16 %v94_v30, %v93_v27  ;;  %v95_v36 = vld [vmem:[%s426_s1 + $0x20] sm:$0xff]  ;;  %v96_v37 = vld [vmem:[%s426_s1 + $0x28] sm:$0xff]  ;;  %s319_s28 = smov 8   ;;  %v97_v41 = vld [vmem:[%s426_s1 + $0x30] sm:$0xff]  ;;  %vm321_vm13 = vmmov 0  }
   0x6   :  { %v20_v7 = vand.u32 4294967264, %v16_v5  ;;  %v21_v8 = vsub.s32 31, %v345_v6  ;;  %v27_v10 = vadd.s32 1, %v345_v6  ;;  %vm30_vm2 = vcmp.ge.s32.totalorder %v345_v6, 1  ;;  %249 = vmatpush3.bf16.msra.mxu0 %v248_v29  ;;  %s320_s29 = smov 120   ;;  %v98_v42 = vld [vmem:[%s426_s1 + $0x38] sm:$0xff] }
   0x7   :  { %v40_v17 = vadd.s32 2, %v345_v6  ;;  %vm43_vm6 = vcmp.ge.s32.totalorder %v345_v6, 2  ;;  %v53_v24 = vadd.s32 4, %v345_v6  ;;  %vm56_vm9 = vcmp.ge.s32.totalorder %v345_v6, 4  ;;  %250 = vmatprep.subr.bf16.mxu0 %v318_v28  ;;  %v99_v44 = vld [vmem:[%s426_s1 + $0x40] sm:$0xff]  ;;  %v100_v45 = vld [vmem:[%s426_s1 + $0x48] sm:$0xff] }
   0x8   :  { %v348_v9 = vor.u32 %v21_v8, %v20_v7  ;;  %vm28_vm1 = vcmp.lt.s32.totalorder %v27_v10, 32  ;;  %v254_v40 = vpack.c.bf16 %v96_v37, %v95_v36  ;;  %v257_v43 = vpack.c.bf16 %v98_v42, %v97_v41  ;;  %v101_v47 = vld [vmem:[%s426_s1 + $0x50] sm:$0xff]  ;;  %v102_v48 = vld [vmem:[%s426_s1 + $0x58] sm:$0xff]  ;;  %v103_v50 = vld [vmem:[%s426_s1 + $0x60] sm:$0xff]  ;;  %s323_s21 = smov 16   ;;  %s326_s22 = smov [#allocation2]  }
   0x9   :  { %vm41_vm5 = vcmp.lt.s32.totalorder %v40_v17, 32  ;;  %vm54_vm10 = vcmp.lt.s32.totalorder %v53_v24, 32  ;;  %v260_v46 = vpack.c.bf16 %v100_v45, %v99_v44  ;;  %v263_v49 = vpack.c.bf16 %v102_v48, %v101_v47  ;;  %v104_v51 = vld [vmem:[%s426_s1 + $0x68] sm:$0xff]  ;;  %v105_v53 = vld [vmem:[%s426_s1 + $0x70] sm:$0xff]  ;;  %v106_v54 = vld [vmem:[%s426_s1 + $0x78] sm:$0xff]  ;;  %s324_s1 = smov 112  }
   0xa   :  { %23 = vrot.lane.b32.xlu0 %v348_v9, %s312_s11  ;;  %252 = vmatpush3.bf16.msra.mxu0 %v251_v35  ;;  %v266_v52 = vpack.c.bf16 %v104_v51, %v103_v50  ;;  %v66_v55 = vadd.s32 8, %v345_v6  ;;  %v269_v56 = vpack.c.bf16 %v106_v54, %v105_v53  ;;  %v322_v57 = vmov 0.0   ;;  %s185_s23 = sshll.u32 %s326_s22, 4  ;;  %s186_s23 = int_to_ptr.vmem [resolvable:$true] %s185_s23 }
   0xb   :  { %253 = vmatprep.subr.bf16.mxu0 %v318_v28  ;;  %244 = vmatprep.mubr.msk.f32.mxu0 %vm321_vm13, %v322_v57  ;;  %vm69_vm14 = vcmp.ge.s32.totalorder %v345_v6, 8  ;;  %v79_v0 = vadd.s32 16, %v345_v6  ;;  %v325_v8 = vmov 1.0   ;;  %s287_s24 = scalar_lea.vmem %s186_s23, 128  ;;  %p292_p1 = scmp.lt.s32.totalorder %s186_s23, %s186_s23 }
   0xc   :  { %vm67_vm15 = vcmp.lt.s32.totalorder %v66_v55, 32  ;;  %p288_p0 = scmp.ne.s32.totalorder %s186_s23, %s287_s24  ;;  %p293_p2 = scmp.lt.s32.totalorder %s287_s24, %s287_s24 }
   0xe   :  { %25 = vrot.lane.b32.xlu0 %v348_v9, %s313_s12  ;;  %255 = vmatpush3.bf16.msra.mxu0 %v254_v40  ;;  %p294_p3 = por %p293_p2, %p292_p1 }
   0xf   :  { %256 = vmatprep.subr.bf16.mxu0 %v318_v28 }
  0x10   :  { %p295_p4 = pnand %p294_p3, %p288_p0 }
  0x12   :  { %258 = vmatpush3.bf16.msra.mxu0 %v257_v43 }
  0x13   :  { %259 = vmatprep.subr.bf16.mxu0 %v318_v28 }
  0x16   :  { %261 = vmatpush3.bf16.msra.mxu0 %v260_v46 }
  0x17   :  { %262 = vmatprep.subr.bf16.mxu0 %v318_v28 }
  0x1a   :  { %264 = vmatpush3.bf16.msra.mxu0 %v263_v49 }
  0x1b   :  { %265 = vmatprep.subr.bf16.mxu0 %v318_v28 }
  0x1e   :  { %267 = vmatpush3.bf16.msra.mxu0 %v266_v52 }
  0x1f   :  { %268 = vmatprep.subr.bf16.mxu0 %v318_v28 }
  0x22   :  { %270 = vmatpush3.bf16.msra.mxu0 %v269_v56 }
  0x7c   :  { %v24_v11 = vpop.permute.xlu0 %23 }
  0x7d   :  { %v29_v13 = vsel %vm28_vm1, %v24_v11, 2147483648 }
  0x80   :  { %v26_v12 = vpop.permute.xlu0 %25 }
  0x81   :  { %v31_v14 = vsel %vm30_vm2, %v26_v12, 2147483648  ;;  %vm82_vm2 = vcmp.ge.s32.totalorder %v345_v6, 16 }
  0x82   :  { %vm32_vm3 = vcmp.gt.s32.totalorder %v29_v13, %v31_v14 }
  0x83   :  { %v33_v15 = vsel %vm32_vm3, %v29_v13, %v31_v14  ;;  %vm80_vm3 = vcmp.lt.s32.totalorder %v79_v0, 32 }
  0x84   :  { %vm34_vm4 = vcmp.gt.s32.totalorder %v348_v9, %v33_v15 }
  0x85   :  { %v35_v16 = vsel %vm34_vm4, %v348_v9, %v33_v15 }
  0x86   :  { %36 = vrot.lane.b32.xlu1 %v35_v16, %s314_s0 }
  0x8a   :  { %38 = vrot.lane.b32.xlu1 %v35_v16, %s315_s13 }
  0xf8   :  { %v37_v18 = vpop.permute.xlu1 %36 }
  0xf9   :  { %v42_v20 = vsel %vm41_vm5, %v37_v18, 2147483648 }
  0xfc   :  { %v39_v19 = vpop.permute.xlu1 %38 }
  0xfd   :  { %v44_v21 = vsel %vm43_vm6, %v39_v19, 2147483648 }
  0xfe   :  { %vm45_vm7 = vcmp.gt.s32.totalorder %v42_v20, %v44_v21 }
  0xff   :  { %v46_v22 = vsel %vm45_vm7, %v42_v20, %v44_v21  ;;  %vm177_vm7 = vcmask 130048  }
 0x100   :  { %vm47_vm8 = vcmp.gt.s32.totalorder %v35_v16, %v46_v22 }
 0x101   :  { %v48_v23 = vsel %vm47_vm8, %v35_v16, %v46_v22 }
 0x102   :  { %51 = vrot.lane.b32.xlu1 %v48_v23, %s316_s14  ;;  %49 = vrot.lane.b32.xlu0 %v48_v23, %s317_s15 }
 0x174   :  { %v52_v31 = vpop.permute.xlu1 %51  ;;  %v50_v32 = vpop.permute.xlu0 %49 }
 0x175   :  { %v57_v33 = vsel %vm56_vm9, %v52_v31, 2147483648  ;;  %v55_v34 = vsel %vm54_vm10, %v50_v32, 2147483648 }
 0x176   :  { %vm58_vm11 = vcmp.gt.s32.totalorder %v55_v34, %v57_v33 }
 0x177   :  { %v59_v38 = vsel %vm58_vm11, %v55_v34, %v57_v33 }
 0x178   :  { %vm60_vm12 = vcmp.gt.s32.totalorder %v48_v23, %v59_v38 }
 0x179   :  { %v61_v39 = vsel %vm60_vm12, %v48_v23, %v59_v38 }
 0x17a   :  { %64 = vrot.lane.b32.xlu1 %v61_v39, %s319_s28  ;;  %62 = vrot.lane.b32.xlu0 %v61_v39, %s320_s29 }
 0x1ec   :  { %v65_v58 = vpop.permute.xlu1 %64  ;;  %v63_v59 = vpop.permute.xlu0 %62 }
 0x1ed   :  { %v70_v60 = vsel %vm69_vm14, %v65_v58, 2147483648  ;;  %v68_v61 = vsel %vm67_vm15, %v63_v59, 2147483648 }
 0x1ee   :  { %vm71_vm0 = vcmp.gt.s32.totalorder %v68_v61, %v70_v60 }
 0x1ef   :  { %v72_v62 = vsel %vm71_vm0, %v68_v61, %v70_v60 }
 0x1f0   :  { %vm73_vm1 = vcmp.gt.s32.totalorder %v61_v39, %v72_v62 }
 0x1f1   :  { %v74_v63 = vsel %vm73_vm1, %v61_v39, %v72_v62 }
 0x1f2   :  { %77 = vrot.lane.b32.xlu1 %v74_v63, %s323_s21  ;;  %75 = vrot.lane.b32.xlu0 %v74_v63, %s324_s1 }
 0x264   :  { %v78_v1 = vpop.permute.xlu1 %77  ;;  %v76_v2 = vpop.permute.xlu0 %75 }
 0x265   :  { %v83_v3 = vsel %vm82_vm2, %v78_v1, 2147483648  ;;  %v81_v4 = vsel %vm80_vm3, %v76_v2, 2147483648 }
 0x266   :  { %vm84_vm4 = vcmp.gt.s32.totalorder %v81_v4, %v83_v3 }
 0x267   :  { %v85_v5 = vsel %vm84_vm4, %v81_v4, %v83_v3 }
 0x268   :  { %vm86_vm5 = vcmp.gt.s32.totalorder %v74_v63, %v85_v5 }
 0x269   :  { %v87_v7 = vsel %vm86_vm5, %v74_v63, %v85_v5 }
 0x26a   :  { %vm88_vm6 = vcmp.eq.s32.totalorder %v348_v9, %v87_v7 }
 0x26b   :  { %245 = vmatmul.mubr.msk.f32.vlgmr.msra.gmra.mrb[0].mxu0 %vm88_vm6, %v325_v8 }
 0x33e   :  { %v173_v10 = vpop.f32.mrb[0].mxu0 }
 0x33f   :  { %178 = vst.msk [vmem:[#allocation2] sm:$0xff] %vm177_vm7, %v173_v10  ;;  %v246_v6 = vpop.f32.mrb[1].mxu0 }
 0x340   :  { %298 = shalt.err (!%p295_p4)
}
 0x341   :  { %s299_s27 = scalar_lea.hbm %s427_s2, 128 }
 0x342   :  { %p300_p5 = scmp.ne.s32.totalorder %s427_s2, %s299_s27  ;;  %p303_p6 = scmp.lt.u32.totalorder %s299_s27, %s427_s2 }
 0x344   :  { %p305_p7 = pnand %p303_p6, %p300_p5 }
 0x346   :  { %308 = shalt.err (!%p305_p7)
}
 0x347   :  { %188 = dma.vmem_to_hbm [thread:$0]  %s186_s23, 128, %s427_s2, [#allocation3]  }
 0x348   :  { %309 = dma.done.wait [#allocation3], 128  }
 0x349   :  { %310 = vsyncadd [#allocation3], 4294967168 }
 0x34a   :  { %192 = vsyncpa [#allocation3], 1 }

</bundles_post_ra>
